<compile_context>
chip_gen: v7x
topology: tpu7x:2x2x1
jax: 0.10.0
libtpu: 0.0.40
codegen_flags: <defaults>
</compile_context>

<pallas_src>
import jax
import jax.numpy as jnp
from jax import lax
from jax.experimental import pallas as pl
from jax.experimental.pallas import tpu as pltpu

ONE_HOT_MAX_ITEMS = 256          # above this, switch to the HBM DMA-gather path
                                 # (on v5e / f32 the crossover is earlier; tune down)
_TARGET_OUT_TILE_BYTES = 2 << 20  # ~2 MiB output tile per grid step
_MAX_ROWS_ONE_HOT = 1024          # caps the (num_items, rows) one-hot intermediate
_MAX_ROWS_DMA = 2048
_MAX_INFLIGHT_DMAS = 64           # row-gather DMAs kept in flight per grid step


def _cdiv(a: int, b: int) -> int:
    return -(-a // b)


def _round_up(x: int, m: int) -> int:
    return _cdiv(x, m) * m


def _min_sublane(dtype) -> int:
    return {4: 8, 2: 16, 1: 32}[jnp.dtype(dtype).itemsize]


def _vmem_capacity_bytes() -> int:
    try:
        return int(pltpu.get_tpu_info().vmem_capacity_bytes)
    except Exception:
        return 64 * 1024 * 1024  # conservative default: v7x per-TensorCore VMEM


def _choose_row_block(n: int, embed_dim: int, itemsize: int, sub: int,
                      max_rows: int) -> int:
    """Rows of output per grid step: ~2 MiB tiles, >=2 steps when possible."""
    target_rows = _TARGET_OUT_TILE_BYTES // max(1, embed_dim * itemsize)
    rb = max(sub, (target_rows // sub) * sub)
    rb = min(rb, max_rows, _round_up(max(n, 1), sub))
    rb = max(rb, sub)
    # Give the v7x megacore at least 2 grid steps when there is enough work.
    if _cdiv(max(n, 1), rb) < 2 and rb > sub:
        rb = max(sub, _round_up(_cdiv(max(n, 1), 2), sub))
    return rb


# ----------------------------------------------------------------------------
# Path A: small vocabulary -> VMEM-resident table, one-hot gather on the MXU.
# ----------------------------------------------------------------------------
def _one_hot_embed_kernel(idx_ref, table_ref, out_ref):
    # idx_ref  : VMEM int32 (1, 1, rows)   lane-dense ids for this tile
    # table_ref: VMEM (num_items, d_pad)   full (small) table, resident
    # out_ref  : VMEM (rows, d_pad)
    num_items = table_ref.shape[0]
    rows = out_ref.shape[0]

    ids = idx_ref[...][0]                                       # (1, rows) int32
    iota_g = lax.broadcasted_iota(jnp.int32, (num_items, rows), 0)
    one_hot_t = (iota_g == ids).astype(table_ref.dtype)         # (num_items, rows)

    # Contract dim 0 of both operands: (G, R)^T . (G, D) -> (R, D) on the MXU.
    acc = lax.dot_general(
        one_hot_t, table_ref[...],
        dimension_numbers=(((0,), (0,)), ((), ())),
        preferred_element_type=jnp.float32)
    out_ref[...] = acc.astype(out_ref.dtype)


def _one_hot_lookup(flat_idx, table, row_block, num_blocks, n_pad, vmem_cap):
    num_items, embed_dim = table.shape
    itemsize = jnp.dtype(table.dtype).itemsize

    # Lane-dense output: pad the (small) table to a multiple of 128 lanes so the
    # output tile stores as unmasked full vregs; the caller slices it back.
    d_pad = _round_up(embed_dim, 128)
    if d_pad != embed_dim:
        table = jnp.pad(table, ((0, 0), (0, d_pad - embed_dim)))

    idx_3d = flat_idx.reshape(num_blocks, 1, row_block)

    est = (2 * num_items * d_pad * itemsize        # resident table (+ headroom buf)
           + 2 * row_block * d_pad * itemsize      # double-buffered output tile
           + 2 * row_block * 4                     # double-buffered idx tile
           + num_items * row_block * 4             # one-hot intermediate
           + (4 << 20))
    vmem_limit = int(min(max(est, 32 << 20), vmem_cap - (2 << 20)))

    return pl.pallas_call(
        _one_hot_embed_kernel,
        out_shape=jax.ShapeDtypeStruct((n_pad, d_pad), table.dtype),
        grid_spec=pltpu.PrefetchScalarGridSpec(
            num_scalar_prefetch=0,
            grid=(num_blocks,),
            in_specs=[
                # Lane-dense, contiguous per-block index tile.
                pl.BlockSpec((1, 1, row_block), lambda i: (i, 0, 0)),
                # Small table, VMEM-resident every step (constant block index).
                pl.BlockSpec((num_items, d_pad), lambda i: (0, 0)),
            ],
            out_specs=pl.BlockSpec((row_block, d_pad), lambda i: (i, 0)),
        ),
        compiler_params=pltpu.CompilerParams(
            dimension_semantics=("parallel",),
            vmem_limit_bytes=vmem_limit,
        ),
    )(idx_3d, table)


# ----------------------------------------------------------------------------
# Path B: larger vocabulary -> table stays in HBM, per-row DMA gather.
# ----------------------------------------------------------------------------
def _dma_gather_embed_kernel(idx_ref, table_hbm, out_ref, copy_sem):
    # idx_ref  : SMEM int32 (n_pad,)    scalar-prefetched row ids
    # table_hbm: HBM ref (num_items, d) never copied wholesale into VMEM
    # out_ref  : VMEM (rows, d)         gathered into directly by DMAs
    rows = out_ref.shape[0]
    base = pl.program_id(0) * rows
    window = min(rows, _MAX_INFLIGHT_DMAS)

    def issue(r):
        pltpu.make_async_copy(
            table_hbm.at[idx_ref[base + r]], out_ref.at[r], copy_sem).start()

    def wait_one():
        # Same-sized dummy descriptor: waits for one completed row copy.
        pltpu.make_async_copy(table_hbm.at[0], out_ref.at[0], copy_sem).wait()

    def _prime(r, c):
        issue(r)
        return c

    lax.fori_loop(0, window, _prime, 0)

    def _steady(r, c):
        wait_one()
        issue(r)
        return c

    lax.fori_loop(window, rows, _steady, 0)

    def _drain(r, c):
        wait_one()
        return c

    lax.fori_loop(0, window, _drain, 0)


def _dma_gather_lookup(flat_idx, table, row_block, num_blocks, n_pad, vmem_cap):
    _, embed_dim = table.shape
    itemsize = jnp.dtype(table.dtype).itemsize

    est = 2 * row_block * embed_dim * itemsize + (4 << 20)  # output tiles only
    vmem_limit = int(min(max(est, 32 << 20), vmem_cap - (2 << 20)))

    return pl.pallas_call(
        _dma_gather_embed_kernel,
        out_shape=jax.ShapeDtypeStruct((n_pad, embed_dim), table.dtype),
        grid_spec=pltpu.PrefetchScalarGridSpec(
            num_scalar_prefetch=1,                          # flat_idx -> SMEM
            grid=(num_blocks,),
            in_specs=[pl.BlockSpec(memory_space=pl.ANY)],   # table stays in HBM
            out_specs=pl.BlockSpec((row_block, embed_dim),
                                   lambda i, idx_ref: (i, 0)),
            scratch_shapes=[pltpu.SemaphoreType.DMA],
        ),
        compiler_params=pltpu.CompilerParams(
            dimension_semantics=("parallel",),
            vmem_limit_bytes=vmem_limit,
        ),
    )(flat_idx, table)


# ----------------------------------------------------------------------------
# Public wrapper: equivalent of nn.Embedding(num_items, embedding_dim)(ids).
# ----------------------------------------------------------------------------
def item_embedding_lookup(item_inputs: jax.Array, table: jax.Array) -> jax.Array:
    num_items, embed_dim = table.shape
    lead_shape = item_inputs.shape
    out_dtype = table.dtype
    itemsize = jnp.dtype(out_dtype).itemsize
    sub = _min_sublane(out_dtype)

    flat_idx = item_inputs.reshape(-1).astype(jnp.int32)
    n = flat_idx.shape[0]
    if n == 0:
        return jnp.zeros(lead_shape + (embed_dim,), out_dtype)

    # PyTorch raises on out-of-range ids; here they are clamped so the DMA path
    # can never issue an out-of-bounds HBM read.
    flat_idx = jnp.clip(flat_idx, 0, num_items - 1)

    use_one_hot = num_items <= ONE_HOT_MAX_ITEMS
    max_rows = _MAX_ROWS_ONE_HOT if use_one_hot else _MAX_ROWS_DMA
    row_block = _choose_row_block(n, embed_dim, itemsize, sub, max_rows)
    num_blocks = _cdiv(n, row_block)
    n_pad = num_blocks * row_block
    if n_pad != n:
        flat_idx = jnp.pad(flat_idx, (0, n_pad - n))  # pad ids -> row 0, sliced off

    vmem_cap = _vmem_capacity_bytes()
    if use_one_hot:
        out_flat = _one_hot_lookup(flat_idx, table, row_block, num_blocks,
                                   n_pad, vmem_cap)
    else:
        out_flat = _dma_gather_lookup(flat_idx, table, row_block, num_blocks,
                                      n_pad, vmem_cap)

    if n_pad != n:
        out_flat = out_flat[:n]
    if out_flat.shape[1] != embed_dim:      # only the one-hot path pads lanes
        out_flat = out_flat[:, :embed_dim]
    return out_flat.reshape(*lead_shape, embed_dim)


def _reference(table, idx):
    return jnp.take(table, idx, axis=0)


if __name__ == "__main__":
    key = jax.random.PRNGKey(0)
    k0, k1, k2, k3, k4, k5, k6, k7 = jax.random.split(key, 8)

    # 1) Small vocab -> VMEM-resident one-hot/MXU path (module defaults).
    num_items, embedding_dim, batch, seq = 16, 128, 2, 8
    table = jax.random.normal(k0, (num_items, embedding_dim), dtype=jnp.float32)
    items = jax.random.randint(k1, (batch, seq), 0, num_items, dtype=jnp.int32)
    out = jax.block_until_ready(item_embedding_lookup(items, table))
    assert out.shape == (batch, seq, embedding_dim)
    assert jnp.allclose(out, _reference(table, items)), "one-hot path mismatch"

    # 2) Larger vocab -> HBM-resident table, DMA-gather path.
    num_items2, dim2 = 1024, 128
    table2 = jax.random.normal(k2, (num_items2, dim2), dtype=jnp.float32)
    items2 = jax.random.randint(k3, (batch, seq), 0, num_items2, dtype=jnp.int32)
    out2 = jax.block_until_ready(item_embedding_lookup(items2, table2))
    assert out2.shape == (batch, seq, dim2)
    assert jnp.allclose(out2, _reference(table2, items2)), "DMA path mismatch"

    # 3) DMA path with a non-multiple-of-128 embedding dim and a ragged count.
    num_items3, dim3 = 300, 96
    table3 = jax.random.normal(k4, (num_items3, dim3), dtype=jnp.float32)
    items3 = jax.random.randint(k5, (3, 5), 0, num_items3, dtype=jnp.int32)
    out3 = jax.block_until_ready(item_embedding_lookup(items3, table3))
    assert out3.shape == (3, 5, dim3)
    assert jnp.allclose(out3, _reference(table3, items3)), "DMA ragged mismatch"

    # 4) One-hot path with a non-multiple-of-128 dim (lane padding exercised).
    num_items4, dim4 = 12, 72
    table4 = jax.random.normal(k6, (num_items4, dim4), dtype=jnp.float32)
    items4 = jax.random.randint(k7, (4,), 0, num_items4, dtype=jnp.int32)
    out4 = jax.block_until_ready(item_embedding_lookup(items4, table4))
    assert out4.shape == (4, dim4)
    assert jnp.allclose(out4, _reference(table4, items4)), "one-hot pad mismatch"

    print("KERNEL_OK")
</pallas_src>

<mosaic_0001>
module attributes {stable_mosaic.version = 11 : i64} {
  func.func @_one_hot_embed_kernel(%arg0: i32, %arg1: memref<1x1x8xi32, #tpu.memory_space<vmem>>, %arg2: memref<16x128xf32, #tpu.memory_space<vmem>>, %arg3: memref<8x128xf32, #tpu.memory_space<vmem>>) attributes {dimension_semantics = [#tpu.dimension_semantics<parallel>], iteration_bounds = array<i64: 2>, scalar_prefetch = 0 : i64, scratch_operands = 0 : i64, tpu.core_type = #tpu.core_type<tc>, window_params = [{transform_indices = @transform_0, window_bounds = array<i64: 1, 1, 8>}, {pipeline_mode = #tpu.pipeline_mode<synchronous>, transform_indices = @transform_1, window_bounds = array<i64: 16, 128>}, {transform_indices = @transform_2, window_bounds = array<i64: 8, 128>}]} {
    %c0 = arith.constant 0 : index
    %c0_0 = arith.constant 0 : index
    %c0_1 = arith.constant 0 : index
    %0 = vector.load %arg1[%c0, %c0_0, %c0_1] : memref<1x1x8xi32, #tpu.memory_space<vmem>>, vector<1x1x8xi32>
    %1 = vector.shape_cast %0 : vector<1x1x8xi32> to vector<1x8xi32>
    %2 = tpu.iota {dimensions = array<i32: 0>} : vector<16x8xi32>
    %3 = vector.broadcast %1 : vector<1x8xi32> to vector<16x8xi32>
    %4 = arith.cmpi eq, %2, %3 : vector<16x8xi32>
    %5 = arith.extui %4 : vector<16x8xi1> to vector<16x8xi32>
    %6 = arith.sitofp %5 : vector<16x8xi32> to vector<16x8xf32>
    %c0_2 = arith.constant 0 : index
    %c0_3 = arith.constant 0 : index
    %7 = vector.load %arg2[%c0_2, %c0_3] : memref<16x128xf32, #tpu.memory_space<vmem>>, vector<16x128xf32>
    %cst = arith.constant dense<0.000000e+00> : vector<8x128xf32>
    %8 = tpu.matmul %6, %7, %cst {dimension_numbers = #tpu.dot_dimension_numbers<[0], [0], [1], [1], [0, 1, 1, 1], [], []>} : vector<16x8xf32>, vector<16x128xf32>, vector<8x128xf32> -> vector<8x128xf32>
    %c0_4 = arith.constant 0 : index
    %c0_5 = arith.constant 0 : index
    %9 = vector.load %arg3[%c0_4, %c0_5] : memref<8x128xf32, #tpu.memory_space<vmem>>, vector<8x128xf32>
    tpu.vector_store %arg3[%c0_4, %c0_5], %8 {strides = array<i32>} : memref<8x128xf32, #tpu.memory_space<vmem>>, vector<8x128xf32>,
    return
  }
  func.func @transform_0(%arg0: i32) -> (i32, i32, i32) {
    %c0_i32 = arith.constant 0 : i32
    %c0_i32_0 = arith.constant 0 : i32
    %c0_i32_1 = arith.constant 0 : i32
    return %arg0, %c0_i32, %c0_i32_0 : i32, i32, i32
  }
  func.func @transform_1(%arg0: i32) -> (i32, i32) {
    %c0_i32 = arith.constant 0 : i32
    %c0_i32_0 = arith.constant 0 : i32
    %c0_i32_1 = arith.constant 0 : i32
    return %c0_i32, %c0_i32_0 : i32, i32
  }
  func.func @transform_2(%arg0: i32) -> (i32, i32) {
    %c0_i32 = arith.constant 0 : i32
    %c0_i32_0 = arith.constant 0 : i32
    return %arg0, %c0_i32 : i32, i32
  }
}

</mosaic_0001>

<bundles_post_ra>
// kernel: tpu_custom_call.1
= control target key start
LH: loop header
LB: loop body
LE: loop exit
PB: predicated region body
PF: predicated region fallthrough
CT: control target
= control target key end

     0   :  { %7 = vsyncpa [#allocation3], 0  ;;  %s826_s0 = inlined_call_operand.hbm [shape: s32[2,1,8], index: 0, kind: input, shape index: {}]   ;;  %s827_s1 = inlined_call_operand.hbm [shape: f32[16,128], index: 1, kind: input, shape index: {}]   ;;  %s828_s2 = inlined_call_operand.hbm [shape: f32[16,128], index: 2, kind: output, shape index: {}]  }
   0x1   :  { %9 = vsyncpa [#allocation3 + $0x1], 0 }
   0x2   :  { %10 = vsyncpa [#allocation6], 0 }
   0x3   :  { %11 = vsyncpa [#allocation4], 0 }
   0x4   :  { %13 = vsyncpa [#allocation4 + $0x1], 0  ;;  %s629_s9 = smov 0   ;;  %s631_s10 = smov 0  }
   0x5   :  { %s633_s11 = smov 0   ;;  %s635_s12 = smov 0  }
   0x6 LB: > { %s650_s13 = sadd.s32 4294967295, %s604_s12   ;;  %s385_s14 = sadd.s32 4294967294, %s604_s12   ;;  %s604_s12 = sphi %s635_s12, %s848_s12   ;;  %s600_s11 = sphi %s633_s11, %s847_s11   ;;  %s596_s10 = sphi %s631_s10, %s846_s10   ;;  %s592_s9 = sphi %s629_s9, %s845_s9  }
   0x7   : > { %p39_p0 = scmp.ne.s32.totalorder %s596_s10, %s592_s9  ;;  %p829_p1 = scmp.eq.s32.totalorder %s650_s13, 0 }
   0x8   : > { %p90_p3 = scmp.eq.s32.totalorder %s385_s14, 1  ;;  %p386_p5 = scmp.ge.s32.totalorder %s604_s12, 1 }
   0x9   : > { %p659_p4 = por %p829_p1, %p39_p0  ;;  %p97_p7 = scmp.lt.s32.totalorder %s604_s12, 3 }
   0xa   : > { %p664_p6 = por %p90_p3, %p39_p0  ;;  %s606_s18 = smov [#allocation5]  }
   0xb   : > { %s832_s15 = scalar_select %p659_p4, 1, 0 }
   0xc   : > { %s833_s16 = scalar_select %p664_p6, 1, 0 }
   0xd   : > { %p669_p8 = pnand %p386_p5, %p97_p7  ;;  %s109_s19 = sshll.u32 %s606_s18, 4  ;;  %s673_s19 = int_to_ptr.vmem [resolvable:$true] %s109_s19 }
   0xe   : > { %s685_s21 = sadd.s32 1, %s604_s12   ;;  %s26_s22 = sadd.s32 1, %s600_s11 }
   0xf   : > { %s834_s17 = scalar_select %p669_p8, 1, 0 }
  0x10   : > { %p422_p9 = pneg %p669_p8  ;;  %s23_s23 = ssub.s32 %s604_s12, %s685_s21 }
  0x11   : > { %s476_s26 = scalar_lea.hbm %s827_s1, 256 }
  0x12   : > { %p680_p11 = pnand %p422_p9, %p829_p1  ;;  %p477_p12 = scmp.ne.s32.totalorder %s827_s1, %s476_s26 }
  0x13   : > { %p483_p5 = scmp.lt.u32.totalorder %s476_s26, %s827_s1 }
  0x14   : > { %p478_p13 = pneg %p680_p11 }
  0x16   : > { %p479_p0 = pnand %p478_p13, %p477_p12 }
  0x18   : > { %p480_p3 = pneg %p479_p0 }
  0x1a   : > { %p485_p7 = pnand %p483_p5, %p480_p3 }
  0x1c   : > { %488 = shalt.err (!%p485_p7)
}
  0x1d   : > { %s489_s3 = scalar_lea.vmem %s673_s19, 256  ;;  %p497_p2 = scmp.lt.s32.totalorder %s673_s19, %s673_s19 }
  0x1e   : > { %p490_p9 = scmp.ne.s32.totalorder %s673_s19, %s489_s3  ;;  %p498_p6 = scmp.lt.s32.totalorder %s489_s3, %s489_s3 }
  0x20   : > { %p492_p10 = pnand %p490_p9, %p478_p13  ;;  %p499_p4 = por %p498_p6, %p497_p2 }
  0x22   : > { %p493_p1 = pneg %p492_p10 }
  0x24   : > { %p500_p8 = pnand %p499_p4, %p493_p1 }
  0x26   : > { %503 = shalt.err (!%p500_p8)
}
  0x27   : > { %s607_s4 = smov 128   ;;  %s608_s5 = smov 8  }
  0x28   : > { %425 = dma.hbm_to_vmem [thread:$0]  (!%p680_p11), %s827_s1, 256, %s673_s19, [#allocation6], %s607_s4, %s607_s4, %s608_s5  }
  0x29   : > { %p24_p2 = scmp.eq.s32.totalorder %s23_s23, 0  ;;  %p33_p1 = scmp.ne.s32.totalorder %s600_s11, %s596_s10 }
  0x2a   : > { %p34_p4 = scmp.eq.s32.totalorder %s604_s12, 0  ;;  %p435_p6 = scmp.lt.s32.totalorder %s604_s12, 2 }
  0x2b   : > { %s716_s8 = scalar_select %p24_p2, %s600_s11, %s26_s22  }
  0x2c   : > { %p35_p8 = por %p34_p4, %p33_p1  ;;  %p836_p10 = scmp.eq.s32.totalorder %s650_s13, 1 }
  0x2d   : > { %s123_s18 = sand.u32 1, %s600_s11   ;;  %s389_s24 = sshll.u32 %s604_s12, 4 }
  0x2e   : > { %p720_p12 = por %p836_p10, %p33_p1  ;;  %s729_s26 = scalar_lea.hbm %s826_s0, %s389_s24 }
  0x2f   : > { %s126_s19 = scalar_lea.vmem [#allocation2], %s123_s18  ;;  %p733_p11 = pnand %p435_p6, %p35_p8 }
  0x30   : > { %s133_s22 = sshll.u32 %s126_s19, 4  ;;  %s124_s27 = scalar_lea.sflag [#allocation3], %s123_s18  ;;  %s731_s22 = int_to_ptr.vmem [resolvable:$true] %s133_s22 }
  0x31   : > { %s504_s28 = scalar_lea.hbm %s729_s26, 16  ;;  %p506_p0 = pneg %p733_p11 }
  0x32   : > { %p505_p13 = scmp.ne.s32.totalorder %s729_s26, %s504_s28  ;;  %s509_s3 = scalar_lea.hbm %s826_s0, 32 }
  0x33   : > { %p510_p7 = scmp.lt.u32.totalorder %s729_s26, %s826_s0  ;;  %p511_p9 = scmp.lt.u32.totalorder %s509_s3, %s504_s28 }
  0x34   : > { %p507_p3 = pnand %p506_p0, %p505_p13  ;;  %p513_p1 = scmp.lt.u32.totalorder %s504_s28, %s729_s26 }
  0x35   : > { %p512_p2 = por %p511_p9, %p510_p7 }
  0x36   : > { %p508_p5 = pneg %p507_p3 }
  0x37   : > { %p514_p4 = por %p513_p1, %p512_p2 }
  0x39   : > { %p515_p6 = pnand %p514_p4, %p508_p5 }
  0x3b   : > { %518 = shalt.err (!%p515_p6)
}
  0x3c   : > { %s519_s6 = scalar_lea.vmem %s731_s22, 16  ;;  %s609_s7 = smov [#allocation2]  }
  0x3d   : > { %p520_p8 = scmp.ne.s32.totalorder %s731_s22, %s519_s6  ;;  %s524_s18 = sshll.u32 %s609_s7, 4  ;;  %s525_s18 = int_to_ptr.vmem [resolvable:$false] %s524_s18 }
  0x3e   : > { %s526_s24 = scalar_lea.vmem %s525_s18, 32  ;;  %p527_p3 = scmp.lt.s32.totalorder %s731_s22, %s525_s18 }
  0x3f   : > { %p522_p10 = pnand %p520_p8, %p506_p0  ;;  %p528_p7 = scmp.lt.s32.totalorder %s526_s24, %s519_s6 }
  0x41   : > { %p523_p13 = pneg %p522_p10  ;;  %p529_p9 = por %p528_p7, %p527_p3 }
  0x43   : > { %p530_p2 = pnand %p529_p9, %p523_p13 }
  0x45   : > { %533 = shalt.err (!%p530_p2)
}
  0x46   : > { %429 = dma.hbm_to_vmem [thread:$0]  (!%p733_p11), %s729_s26, 16, %s731_s22, %s124_s27  }
  0x47   : > { %p839_p5 = scmp.ne.s32.totalorder %s834_s17, 0 }
  0x48   : > { %s765_s25 = sand.u32 (!%p839_p5), 1, %s596_s10   ;;  %p840_p0 = scmp.ne.s32.totalorder (!%p839_p5), %s832_s15, 0 }
  0x49   : > { %142 = sbr.rel (%p839_p5) target bundleno = 445 (0x1bd), region = 28  ;;  %s145_s20 = scalar_lea.sflag (!%p839_p5), [#allocation3], %s765_s25 }
  0x4a   : > { %s147_s19 = scalar_lea.vmem (!%p839_p5), [#allocation2], %s765_s25 }
  0x50   : > { %579 = dma.done.wait (%p840_p0), %s145_s20, 16  }
  0x51   : > { %581 = vsyncadd (%p840_p0), %s145_s20, 4294967280  ;;  %p841_p1 = scmp.eq.s32.totalorder %s650_s13, 0 }
  0x53   : > { %583 = dma.done.wait (%p841_p1), [#allocation6], 256   ;;  %p842_p11 = pmov %p841_p1 }
  0x54   : > { %v172_v0 = vlaneseq  ;;  %v610_v1 = vmov 0.0|0.0   ;;  %vm611_vm0 = vmmov 0   ;;  %v612_v2 = vmov 0.0   ;;  %v393_v5 = vld [vmem:[%s147_s19] ss:$0 sm:$0xff]  ;;  %v185_v6 = vld [vmem:[#allocation5] sm:$0xff] }
  0x55   : > { %585 = vsyncadd (%p842_p11), [#allocation6], 4294967040  ;;  %411 = vmatprep.subr.bf16.mxu0 %v610_v1  ;;  %408 = vmatprep.mubr.msk.f32.mxu0 %vm611_vm0, %v612_v2  ;;  %v186_v7 = vld [vmem:[#allocation5 + $0x8] sm:$0xff]  ;;  %vm219_vm3 = vcmask 130048   ;;  %s392_s15 = sshll.u32 %s765_s25, 3  ;;  %s398_s22 = sshll.u32 %s650_s13, 7 }
  0x56   : > { %v173_v3 = vshrl.u32 %v172_v0, 7  ;;  %v412_v8 = vpack.c.bf16 %v186_v7, %v185_v6  ;;  %s170_s17 = scalar_lea.vmem [#allocation7], %s392_s15  ;;  %s784_s28 = scalar_lea.hbm %s828_s2, %s398_s22 }
  0x57   : > { %s308_s26 = sshll.u32 %s170_s17, 4  ;;  %s295_s29 = scalar_lea.sflag [#allocation4], %s765_s25  ;;  %s779_s26 = int_to_ptr.vmem [resolvable:$true] %s308_s26 }
  0x58   : > { %v174_v4 = vadd.s32 8, %v173_v3  ;;  %vm179_vm1 = vcmp.eq.s32.totalorder %v173_v3, %v393_v5  ;;  %413 = vmatpush3.bf16.msra.mxu0 %v412_v8  ;;  %s534_s30 = scalar_lea.vmem %s779_s26, 128  ;;  %s613_s13 = smov [#allocation7]  }
  0x59   : > { %v394_v9 = vsel %vm179_vm1, 1.0, %v612_v2  ;;  %p535_p4 = scmp.ne.s32.totalorder %s779_s26, %s534_s30  ;;  %s538_s3 = sshll.u32 %s613_s13, 4  ;;  %s539_s3 = int_to_ptr.vmem [resolvable:$false] %s538_s3 }
  0x5a   : > { %vm180_vm2 = vcmp.eq.s32.totalorder %v174_v4, %v393_v5  ;;  %187 = vxpose.xlu0.b32.start [1/2] (short) (narrow) %v394_v9, 8  ;;  %s540_s4 = scalar_lea.vmem %s539_s3, 256  ;;  %p541_p10 = scmp.lt.s32.totalorder %s779_s26, %s539_s3 }
  0x5b   : > { %v395_v10 = vsel %vm180_vm2, 1.0, %v612_v2  ;;  %p536_p6 = pnand %p535_p4, %p720_p12  ;;  %p542_p13 = scmp.lt.s32.totalorder %s540_s4, %s534_s30 }
  0x5d   : > { %p537_p8 = pneg %p536_p6  ;;  %p543_p3 = por %p542_p13, %p541_p10 }
  0x5e   : > { %188 = vxpose.xlu0.b32.end [2/2] (short) (narrow) %v395_v10, 8 }
  0x5f   : > { %p544_p7 = pnand %p543_p3, %p537_p8 }
  0xda   : > { %v203_v11 = vpop.trf.xlu0 }
  0xdb   : > { %409 = vmatmul.mubr.msk.f32.vlgmr.msra.gmra.mrb[0].mxu0 %vm219_vm3, %v203_v11 }
 0x1ae   : > { %v289_v12 = vpop.f32.mrb[0].mxu0 }
 0x1af   : > { %293 = vst [vmem:[%s170_s17] sm:$0xff] %v289_v12  ;;  %v410_v13 = vpop.f32.mrb[1].mxu0 }
 0x1b0   : > { %547 = shalt.err (!%p544_p7)
}
 0x1b1   : > { %s548_s5 = scalar_lea.hbm %s784_s28, 128  ;;  %s552_s18 = scalar_lea.hbm %s828_s2, 256 }
 0x1b2   : > { %p549_p9 = scmp.ne.s32.totalorder %s784_s28, %s548_s5  ;;  %p553_p0 = scmp.lt.u32.totalorder %s784_s28, %s828_s2 }
 0x1b3   : > { %p554_p1 = scmp.lt.u32.totalorder %s552_s18, %s548_s5  ;;  %p556_p4 = scmp.lt.u32.totalorder %s548_s5, %s784_s28 }
 0x1b4   : > { %p550_p2 = pnand %p549_p9, %p720_p12 }
 0x1b5   : > { %p555_p11 = por %p554_p1, %p553_p0 }
 0x1b6   : > { %p551_p5 = pneg %p550_p2 }
 0x1b7   : > { %p557_p6 = por %p556_p4, %p555_p11 }
 0x1b9   : > { %p558_p8 = pnand %p557_p6, %p551_p5 }
 0x1bb   : > { %561 = shalt.err (!%p558_p8)
}
 0x1bc   : > { %420 = dma.vmem_to_hbm [thread:$0]  (%p720_p12), %s779_s26, 128, %s784_s28, %s295_s29  }
 0x1bd PF: > { %s320_s20 = sand.u32 1, %s592_s9   ;;  %p843_p10 = scmp.ne.s32.totalorder %s833_s16, 0 }
 0x1be   : > { %p844_p13 = scmp.ge.s32.totalorder %s604_s12, 2  ;;  %s321_s19 = scalar_lea.sflag [#allocation4], %s320_s20 }
 0x1c0   : > { %p431_p3 = pnand %p844_p13, %p843_p10 }
 0x1c2   : > { %587 = dma.done.wait (!%p431_p3), %s321_s19, 128  }
 0x1c3   : > { %589 = vsyncadd (!%p431_p3), %s321_s19, 4294967168  ;;  %p16_p7 = scmp.ge.s32.totalorder %s685_s21, 4   ;;  %s845_s9 = smov %s596_s10 }
 0x1c4   : > { %s846_s10 = smov %s600_s11  ;;  %s847_s11 = smov %s716_s8 }
 0x1c5   : > { %s848_s12 = smov %s685_s21  ;;  %18 = sbr.rel (!%p16_p7) target bundleno = 6 (0x6), region = 77 }
 0x1cc   :  { %326 = vsyncpa [#allocation3], 1 }
 0x1cd   :  { %328 = vsyncpa [#allocation3 + $0x1], 1 }
 0x1ce   :  { %329 = vsyncpa [#allocation6], 1 }
 0x1cf   :  { %330 = vsyncpa [#allocation4], 1 }
 0x1d0   :  { %332 = vsyncpa [#allocation4 + $0x1], 1 }

</bundles_post_ra>
